<compile_context>
chip_gen: v7x
topology: tpu7x:2x2x1
jax: 0.10.0
libtpu: 0.0.40
codegen_flags: <defaults>
</compile_context>

<pallas_src>
import jax
import jax.numpy as jnp
from jax.experimental import pallas as pl
from jax.experimental.pallas import tpu as pltpu


def _round_up(a: int, b: int) -> int:
    return ((a + b - 1) // b) * b


def scale_matmul_kernel(x_ref, s_ref, w_ref, o_ref):
    # x_ref : (tm, Cin_p)   f32 activation rows
    # s_ref : (1,  Cin_p)   f32 per-channel scale (broadcast over rows)
    # w_ref : (Cin_p, tn)   bf16/f32 weight slab (resident across the i axis)
    # o_ref : (tm, tn)      f32 output tile
    xs = (x_ref[...] * s_ref[...]).astype(w_ref.dtype)          # fused channel scale (VPU has slack)
    o_ref[...] = jnp.dot(xs, w_ref[...],
                         preferred_element_type=jnp.float32).astype(o_ref.dtype)


def fused_scale_conv1x1(x_nchw, scale_nc11, weight_oi11, *,
                        tm=256, tn=512, weight_dtype=jnp.bfloat16):
    """Conv2d(1x1, bias=False)(scale * x), same semantics as the PyTorch module.

    x_nchw     : (N, Cin, H, W)
    scale_nc11 : (1, Cin, 1, 1)
    weight_oi11: (Cout, Cin, 1, 1)
    returns    : (N, Cout, H, W) float32
    """
    N, Cin, H, W = x_nchw.shape
    Cout = weight_oi11.shape[0]
    M = N * H * W

    # Clamp tiles to the (padded) problem size; keep (8, 128) alignment.
    tm = min(tm, _round_up(M, 8))
    tn = min(tn, _round_up(Cout, 128))

    M_pad = _round_up(M, tm)
    Cin_pad = _round_up(Cin, 128)
    Cout_pad = _round_up(Cout, tn)

    # --- layout glue: channels-last, flattened pixel rows ---
    # TODO(synk): if the surrounding model keeps activations NHWC these two
    # transposes (one extra HBM pass each) disappear entirely.
    x_flat = jnp.transpose(x_nchw, (0, 2, 3, 1)).reshape(M, Cin)
    scale = scale_nc11.reshape(1, Cin).astype(jnp.float32)
    w = weight_oi11.reshape(Cout, Cin).T.astype(weight_dtype)        # (Cin, Cout)

    # Zero-pad to tile multiples (padded K rows/cols contribute exactly zero).
    x_p = jnp.pad(x_flat, ((0, M_pad - M), (0, Cin_pad - Cin)))
    s_p = jnp.pad(scale, ((0, 0), (0, Cin_pad - Cin)))
    w_p = jnp.pad(w, ((0, Cin_pad - Cin), (0, Cout_pad - Cout)))

    # j (Cout slab) outer, i (row tile) inner: each weight slab is fetched once
    # and stays resident in VMEM across every row tile.
    grid = (Cout_pad // tn, M_pad // tm)

    out_flat = pl.pallas_call(
        scale_matmul_kernel,
        out_shape=jax.ShapeDtypeStruct((M_pad, Cout_pad), jnp.float32),
        grid_spec=pltpu.PrefetchScalarGridSpec(
            num_scalar_prefetch=0,
            grid=grid,
            in_specs=[
                pl.BlockSpec((tm, Cin_pad), lambda j, i: (i, 0)),     # x rows, full K
                pl.BlockSpec((1, Cin_pad), lambda j, i: (0, 0)),      # scale, loaded once
                pl.BlockSpec((Cin_pad, tn), lambda j, i: (0, j)),     # weight slab, resident over i
            ],
            out_specs=pl.BlockSpec((tm, tn), lambda j, i: (i, j)),
        ),
        compiler_params=pltpu.CompilerParams(
            dimension_semantics=("parallel", "parallel"),
            vmem_limit_bytes=32 * 1024 * 1024,
        ),
    )(x_p, s_p, w_p)

    out_flat = out_flat[:M, :Cout].astype(jnp.float32)
    return jnp.transpose(out_flat.reshape(N, H, W, Cout), (0, 3, 1, 2))


def _reference(x404, x399, conv_w):
    # Same semantics as the PyTorch module: elementwise mul, then 1x1 conv (no bias).
    x405 = x404 * x399
    Cout, Cin = conv_w.shape[0], conv_w.shape[1]
    return jnp.einsum("oc,nchw->nohw", conv_w.reshape(Cout, Cin), x405)


if __name__ == "__main__":
    fn = jax.jit(fused_scale_conv1x1)

    # --- Test 1: small, tile-aligned shapes (module analogue scaled down) ---
    # Real module: N=1, Cin=Cout=2904, H=W=14.
    N, C, H, W = 2, 256, 8, 8
    key = jax.random.PRNGKey(0)
    kx, ks, kw = jax.random.split(key, 3)
    x399 = jax.random.normal(kx, (N, C, H, W), dtype=jnp.float32)
    x404 = jax.random.normal(ks, (1, C, 1, 1), dtype=jnp.float32)
    conv_w = jax.random.normal(kw, (C, C, 1, 1), dtype=jnp.float32) * (1.0 / jnp.sqrt(C))

    out = jax.block_until_ready(fn(x399, x404, conv_w))
    ref = _reference(x404, x399, conv_w)
    assert out.shape == (N, C, H, W)
    # bf16 weight / scaled-activation feed the MXU (f32 accumulation) -> ~1e-2 rel err.
    assert jnp.allclose(out, ref, atol=1e-1, rtol=1e-1), "mismatch vs reference (test 1)"

    # --- Test 2: non-128-divisible channels and non-multiple-of-8 pixel count
    # (exercises the padding path that the real 2904 x 14x14 layer needs) ---
    N2, Cin2, Cout2, H2, W2 = 1, 72, 40, 7, 7
    k2x, k2s, k2w = jax.random.split(jax.random.PRNGKey(1), 3)
    x2 = jax.random.normal(k2x, (N2, Cin2, H2, W2), dtype=jnp.float32)
    s2 = jax.random.normal(k2s, (1, Cin2, 1, 1), dtype=jnp.float32)
    w2 = jax.random.normal(k2w, (Cout2, Cin2, 1, 1), dtype=jnp.float32) * (1.0 / jnp.sqrt(Cin2))

    out2 = jax.block_until_ready(fn(x2, s2, w2))
    ref2 = _reference(s2, x2, w2)
    assert out2.shape == (N2, Cout2, H2, W2)
    assert jnp.allclose(out2, ref2, atol=1e-1, rtol=1e-1), "mismatch vs reference (test 2)"

    print("KERNEL_OK")
</pallas_src>

<mosaic_0001>
module attributes {stable_mosaic.version = 11 : i64} {
  func.func @scale_matmul_kernel(%arg0: i32, %arg1: i32, %arg2: memref<128x256xf32, #tpu.memory_space<vmem>>, %arg3: memref<1x256xf32, #tpu.memory_space<vmem>>, %arg4: memref<256x256xbf16, #tpu.memory_space<vmem>>, %arg5: memref<128x256xf32, #tpu.memory_space<vmem>>) attributes {dimension_semantics = [#tpu.dimension_semantics<parallel>, #tpu.dimension_semantics<parallel>], iteration_bounds = array<i64: 1, 1>, scalar_prefetch = 0 : i64, scratch_operands = 0 : i64, tpu.core_type = #tpu.core_type<tc>, window_params = [{transform_indices = @transform_0, window_bounds = array<i64: 128, 256>}, {pipeline_mode = #tpu.pipeline_mode<synchronous>, transform_indices = @transform_1, window_bounds = array<i64: 1, 256>}, {transform_indices = @transform_2, window_bounds = array<i64: 256, 256>}, {transform_indices = @transform_3, window_bounds = array<i64: 128, 256>}]} {
    %c0 = arith.constant 0 : index
    %c0_0 = arith.constant 0 : index
    %0 = vector.load %arg2[%c0, %c0_0] : memref<128x256xf32, #tpu.memory_space<vmem>>, vector<128x256xf32>
    %c0_1 = arith.constant 0 : index
    %c0_2 = arith.constant 0 : index
    %1 = vector.load %arg3[%c0_1, %c0_2] : memref<1x256xf32, #tpu.memory_space<vmem>>, vector<1x256xf32>
    %2 = vector.broadcast %1 : vector<1x256xf32> to vector<128x256xf32>
    %3 = arith.mulf %0, %2 : vector<128x256xf32>
    %4 = arith.truncf %3 : vector<128x256xf32> to vector<128x256xbf16>
    %c0_3 = arith.constant 0 : index
    %c0_4 = arith.constant 0 : index
    %5 = vector.load %arg4[%c0_3, %c0_4] : memref<256x256xbf16, #tpu.memory_space<vmem>>, vector<256x256xbf16>
    %cst = arith.constant dense<0.000000e+00> : vector<128x256xf32>
    %6 = tpu.matmul %4, %5, %cst {dimension_numbers = #tpu.dot_dimension_numbers<[1], [0], [0], [1], [0, 0, 1, 1], [], []>} : vector<128x256xbf16>, vector<256x256xbf16>, vector<128x256xf32> -> vector<128x256xf32>
    %c0_5 = arith.constant 0 : index
    %c0_6 = arith.constant 0 : index
    %7 = vector.load %arg5[%c0_5, %c0_6] : memref<128x256xf32, #tpu.memory_space<vmem>>, vector<128x256xf32>
    tpu.vector_store %arg5[%c0_5, %c0_6], %6 {strides = array<i32>} : memref<128x256xf32, #tpu.memory_space<vmem>>, vector<128x256xf32>,
    return
  }
  func.func @transform_0(%arg0: i32, %arg1: i32) -> (i32, i32) {
    %c0_i32 = arith.constant 0 : i32
    %c0_i32_0 = arith.constant 0 : i32
    return %arg1, %c0_i32 : i32, i32
  }
  func.func @transform_1(%arg0: i32, %arg1: i32) -> (i32, i32) {
    %c0_i32 = arith.constant 0 : i32
    %c0_i32_0 = arith.constant 0 : i32
    %c0_i32_1 = arith.constant 0 : i32
    return %c0_i32, %c0_i32_0 : i32, i32
  }
  func.func @transform_2(%arg0: i32, %arg1: i32) -> (i32, i32) {
    %c0_i32 = arith.constant 0 : i32
    %c0_i32_0 = arith.constant 0 : i32
    return %c0_i32, %arg0 : i32, i32
  }
  func.func @transform_3(%arg0: i32, %arg1: i32) -> (i32, i32) {
    %c0_i32 = arith.constant 0 : i32
    return %arg1, %arg0 : i32, i32
  }
}

</mosaic_0001>

<bundles_post_ra>
// kernel: fused_scale_conv1x1.1
= control target key start
LH: loop header
LB: loop body
LE: loop exit
PB: predicated region body
PF: predicated region fallthrough
CT: control target
= control target key end

     0   :  { %v49_v8 = vlaneseq  ;;  %s873_s0 = inlined_call_operand.vmem [shape: f32[128,256], index: 0, kind: input, shape index: {}]   ;;  %s874_s1 = inlined_call_operand.vmem [shape: f32[1,256], index: 1, kind: input, shape index: {}]   ;;  %s875_s2 = inlined_call_operand.vmem [shape: bf16[256,256], index: 2, kind: input, shape index: {}]   ;;  %s876_s3 = inlined_call_operand.hbm [shape: f32[128,256], index: 3, kind: output, shape index: {}]  }
   0x1   :  { %v527_v0 = vld [vmem:[%s875_s2 + $0x4] ss:$8 sps:$4 sm:$0xff]   ;;  %v529_v1 = vld [vmem:[%s875_s2] ss:$8 sps:$4 sm:$0xff]   ;;  %v530_v2 = vld [vmem:[%s875_s2 + $0x14] ss:$8 sps:$4 sm:$0xff]  }
   0x2   :  { %299 = vmatprep.subr.bf16.mxu0 %v527_v0  ;;  %492 = vmatprep.subr.bf16.mxu1 %v527_v0  ;;  %v532_v3 = vld [vmem:[%s875_s2 + $0x10] ss:$8 sps:$4 sm:$0xff]   ;;  %v533_v4 = vld [vmem:[%s875_s2 + $0x24] ss:$8 sps:$4 sm:$0xff]   ;;  %v535_v5 = vld [vmem:[%s875_s2 + $0x20] ss:$8 sps:$4 sm:$0xff]  }
   0x3   :  { %300 = vmatpush1.bf16.msra.mxu0 %v529_v1  ;;  %508 = vmatpush1.bf16.msra.mxu1 %v529_v1  ;;  %v536_v6 = vld [vmem:[%s875_s2 + $0x34] ss:$8 sps:$4 sm:$0xff]   ;;  %v538_v7 = vld [vmem:[%s875_s2 + $0x30] ss:$8 sps:$4 sm:$0xff]   ;;  %v539_v9 = vld [vmem:[%s875_s2 + $0x44] ss:$8 sps:$4 sm:$0xff]  }
   0x4   :  { %301 = vmatprep.subr.bf16.mxu0 %v530_v2  ;;  %493 = vmatprep.subr.bf16.mxu1 %v530_v2  ;;  %v541_v10 = vld [vmem:[%s875_s2 + $0x40] ss:$8 sps:$4 sm:$0xff]   ;;  %v652_v11 = vshrl.u32 %v49_v8, 7  ;;  %v542_v12 = vld [vmem:[%s875_s2 + $0x54] ss:$8 sps:$4 sm:$0xff]  }
   0x5   :  { %v544_v13 = vld [vmem:[%s875_s2 + $0x50] ss:$8 sps:$4 sm:$0xff]   ;;  %v545_v15 = vld [vmem:[%s875_s2 + $0x64] ss:$8 sps:$4 sm:$0xff]   ;;  %v673_v18 = vld [vmem:[%s874_s1] sm:$0x3] }
   0x6   :  { %v55_v14 = vsub.s32 1, %v652_v11  ;;  %v16_v16 = vld [vmem:[%s873_s0 + $0x8] sm:$0xff]  ;;  %v18_v17 = vld [vmem:[%s873_s0 + $0x18] sm:$0xff] }
   0x7   :  { %302 = vmatpush1.bf16.msra.mxu0 %v532_v3  ;;  %509 = vmatpush1.bf16.msra.mxu1 %v532_v3  ;;  %v32_v19 = vld [vmem:[%s873_s0 + $0x88] sm:$0xff]  ;;  %v34_v20 = vld [vmem:[%s873_s0 + $0x98] sm:$0xff] }
   0x8   :  { %303 = vmatprep.subr.bf16.mxu0 %v533_v4  ;;  %494 = vmatprep.subr.bf16.mxu1 %v533_v4  ;;  %v547_v21 = vld [vmem:[%s875_s2 + $0x60] ss:$8 sps:$4 sm:$0xff]   ;;  %v685_v22 = vrot.slane %v673_v18, %v55_v14  ;;  %v548_v23 = vld [vmem:[%s875_s2 + $0x74] ss:$8 sps:$4 sm:$0xff]   ;;  %v550_v28 = vld [vmem:[%s875_s2 + $0x70] ss:$8 sps:$4 sm:$0xff]  }
   0x9   :  { %v551_v31 = vld [vmem:[%s875_s2 + $0x84] ss:$8 sps:$4 sm:$0xff]   ;;  %v553_v32 = vld [vmem:[%s875_s2 + $0x80] ss:$8 sps:$4 sm:$0xff]   ;;  %v554_v33 = vld [vmem:[%s875_s2 + $0x94] ss:$8 sps:$4 sm:$0xff]  }
   0xa   :  { %v60_v24 = vmul.f32 %v685_v22, %v16_v16  ;;  %v62_v25 = vmul.f32 %v685_v22, %v18_v17  ;;  %v76_v26 = vmul.f32 %v685_v22, %v32_v19  ;;  %v78_v27 = vmul.f32 %v685_v22, %v34_v20 }
   0xb   :  { %304 = vmatpush1.bf16.msra.mxu0 %v535_v5  ;;  %510 = vmatpush1.bf16.msra.mxu1 %v535_v5 }
   0xc   :  { %305 = vmatprep.subr.bf16.mxu0 %v536_v6  ;;  %495 = vmatprep.subr.bf16.mxu1 %v536_v6  ;;  %v92_v29 = vpack.c.bf16 %v62_v25, %v60_v24  ;;  %v100_v30 = vpack.c.bf16 %v78_v27, %v76_v26 }
   0xe   :  { %331 = vmatprep.mubr.bf16.mxu0 %v92_v29  ;;  %371 = vmatprep.mubr.bf16.mxu1 %v100_v30 }
   0xf   :  { %306 = vmatpush1.bf16.msra.mxu0 %v538_v7  ;;  %511 = vmatpush1.bf16.msra.mxu1 %v538_v7 }
  0x10   :  { %307 = vmatprep.subr.bf16.mxu0 %v539_v9  ;;  %496 = vmatprep.subr.bf16.mxu1 %v539_v9 }
  0x13   :  { %308 = vmatpush1.bf16.msra.mxu0 %v541_v10  ;;  %512 = vmatpush1.bf16.msra.mxu1 %v541_v10 }
  0x14   :  { %309 = vmatprep.subr.bf16.mxu0 %v542_v12  ;;  %497 = vmatprep.subr.bf16.mxu1 %v542_v12 }
  0x17   :  { %310 = vmatpush1.bf16.msra.mxu0 %v544_v13  ;;  %513 = vmatpush1.bf16.msra.mxu1 %v544_v13 }
  0x18   :  { %311 = vmatprep.subr.bf16.mxu0 %v545_v15  ;;  %498 = vmatprep.subr.bf16.mxu1 %v545_v15 }
  0x1b   :  { %312 = vmatpush1.bf16.msra.mxu0 %v547_v21  ;;  %514 = vmatpush1.bf16.msra.mxu1 %v547_v21 }
  0x1c   :  { %313 = vmatprep.subr.bf16.mxu0 %v548_v23  ;;  %499 = vmatprep.subr.bf16.mxu1 %v548_v23 }
  0x1f   :  { %314 = vmatpush1.bf16.msra.mxu0 %v550_v28  ;;  %515 = vmatpush1.bf16.msra.mxu1 %v550_v28 }
  0x20   :  { %315 = vmatprep.subr.bf16.mxu0 %v551_v31  ;;  %500 = vmatprep.subr.bf16.mxu1 %v551_v31 }
  0x21   :  { %8 = vsyncpa [#allocation3], 0  ;;  %v556_v34 = vld [vmem:[%s875_s2 + $0x90] ss:$8 sps:$4 sm:$0xff]   ;;  %v557_v35 = vld [vmem:[%s875_s2 + $0xa4] ss:$8 sps:$4 sm:$0xff]  }
  0x22   :  { %v559_v36 = vld [vmem:[%s875_s2 + $0xa0] ss:$8 sps:$4 sm:$0xff]   ;;  %v560_v37 = vld [vmem:[%s875_s2 + $0xb4] ss:$8 sps:$4 sm:$0xff]   ;;  %v562_v38 = vld [vmem:[%s875_s2 + $0xb0] ss:$8 sps:$4 sm:$0xff]  }
  0x23   :  { %316 = vmatpush1.bf16.msra.mxu0 %v553_v32  ;;  %516 = vmatpush1.bf16.msra.mxu1 %v553_v32  ;;  %v563_v39 = vld [vmem:[%s875_s2 + $0xc4] ss:$8 sps:$4 sm:$0xff]   ;;  %v565_v40 = vld [vmem:[%s875_s2 + $0xc0] ss:$8 sps:$4 sm:$0xff]   ;;  %v566_v41 = vld [vmem:[%s875_s2 + $0xd4] ss:$8 sps:$4 sm:$0xff]  }
  0x24   :  { %317 = vmatprep.subr.bf16.mxu0 %v554_v33  ;;  %501 = vmatprep.subr.bf16.mxu1 %v554_v33  ;;  %v51_v42 = vsub.s32 0, %v652_v11  ;;  %v568_v43 = vld [vmem:[%s875_s2 + $0xd0] ss:$8 sps:$4 sm:$0xff]   ;;  %v569_v44 = vld [vmem:[%s875_s2 + $0xe4] ss:$8 sps:$4 sm:$0xff]  }
  0x25   :  { %v571_v45 = vld [vmem:[%s875_s2 + $0xe0] ss:$8 sps:$4 sm:$0xff]   ;;  %v572_v47 = vld [vmem:[%s875_s2 + $0xf4] ss:$8 sps:$4 sm:$0xff]   ;;  %v574_v61 = vld [vmem:[%s875_s2 + $0xf0] ss:$8 sps:$4 sm:$0xff]  }
  0x26   :  { %v741_v46 = vrot.slane %v673_v18, %v51_v42  ;;  %v15_v48 = vld [vmem:[%s873_s0] sm:$0xff]  ;;  %v17_v49 = vld [vmem:[%s873_s0 + $0x10] sm:$0xff]  ;;  %v20_v52 = vld [vmem:[%s873_s0 + $0x28] sm:$0xff] }
  0x27   :  { %318 = vmatpush1.bf16.msra.mxu0 %v556_v34  ;;  %517 = vmatpush1.bf16.msra.mxu1 %v556_v34  ;;  %v31_v50 = vld [vmem:[%s873_s0 + $0x80] sm:$0xff]  ;;  %v33_v51 = vld [vmem:[%s873_s0 + $0x90] sm:$0xff]  ;;  %v22_v53 = vld [vmem:[%s873_s0 + $0x38] sm:$0xff]  ;;  %v64_v60 = vmul.f32 %v685_v22, %v20_v52 }
  0x28   :  { %319 = vmatprep.subr.bf16.mxu0 %v557_v35  ;;  %502 = vmatprep.subr.bf16.mxu1 %v557_v35  ;;  %v36_v54 = vld [vmem:[%s873_s0 + $0xa8] sm:$0xff]  ;;  %v38_v55 = vld [vmem:[%s873_s0 + $0xb8] sm:$0xff]  ;;  %v59_v56 = vmul.f32 %v741_v46, %v15_v48  ;;  %v61_v57 = vmul.f32 %v741_v46, %v17_v49  ;;  %v75_v58 = vmul.f32 %v741_v46, %v31_v50  ;;  %v19_v3 = vld [vmem:[%s873_s0 + $0x20] sm:$0xff] }
  0x29   :  { %v77_v59 = vmul.f32 %v741_v46, %v33_v51  ;;  %v66_v62 = vmul.f32 %v685_v22, %v22_v53  ;;  %v80_v63 = vmul.f32 %v685_v22, %v36_v54  ;;  %v82_v0 = vmul.f32 %v685_v22, %v38_v55  ;;  %v21_v4 = vld [vmem:[%s873_s0 + $0x30] sm:$0xff]  ;;  %v35_v7 = vld [vmem:[%s873_s0 + $0xa0] sm:$0xff]  ;;  %v24_v9 = vld [vmem:[%s873_s0 + $0x48] sm:$0xff] }
  0x2a   :  { %v91_v1 = vpack.c.bf16 %v61_v57, %v59_v56  ;;  %v37_v8 = vld [vmem:[%s873_s0 + $0xb0] sm:$0xff]  ;;  %v26_v10 = vld [vmem:[%s873_s0 + $0x58] sm:$0xff]  ;;  %v40_v11 = vld [vmem:[%s873_s0 + $0xc8] sm:$0xff]  ;;  %v63_v13 = vmul.f32 %v741_v46, %v19_v3  ;;  %v65_v14 = vmul.f32 %v741_v46, %v21_v4  ;;  %v79_v15 = vmul.f32 %v741_v46, %v35_v7 }
  0x2b   :  { %320 = vmatpush1.bf16.msra.mxu0 %v559_v36  ;;  %518 = vmatpush1.bf16.msra.mxu1 %v559_v36  ;;  %v99_v2 = vpack.c.bf16 %v77_v59, %v75_v58  ;;  %v94_v5 = vpack.c.bf16 %v66_v62, %v64_v60  ;;  %v102_v6 = vpack.c.bf16 %v82_v0, %v80_v63  ;;  %v42_v12 = vld [vmem:[%s873_s0 + $0xd8] sm:$0xff]  ;;  %v23_v24 = vld [vmem:[%s873_s0 + $0x40] sm:$0xff]  ;;  %v25_v25 = vld [vmem:[%s873_s0 + $0x50] sm:$0xff] }
  0x2c   :  { %321 = vmatprep.subr.bf16.mxu0 %v560_v37  ;;  %503 = vmatprep.subr.bf16.mxu1 %v560_v37  ;;  %v81_v16 = vmul.f32 %v741_v46, %v37_v8  ;;  %v68_v17 = vmul.f32 %v685_v22, %v24_v9  ;;  %v70_v18 = vmul.f32 %v685_v22, %v26_v10  ;;  %v39_v28 = vld [vmem:[%s873_s0 + $0xc0] sm:$0xff]  ;;  %v41_v29 = vld [vmem:[%s873_s0 + $0xd0] sm:$0xff]  ;;  %v28_v30 = vld [vmem:[%s873_s0 + $0x68] sm:$0xff] }
  0x2d   :  { %v84_v19 = vmul.f32 %v685_v22, %v40_v11  ;;  %v86_v20 = vmul.f32 %v685_v22, %v42_v12  ;;  %v93_v21 = vpack.c.bf16 %v65_v14, %v63_v13  ;;  %v30_v31 = vld [vmem:[%s873_s0 + $0x78] sm:$0xff]  ;;  %v44_v32 = vld [vmem:[%s873_s0 + $0xe8] sm:$0xff]  ;;  %v67_v34 = vmul.f32 %v741_v46, %v23_v24  ;;  %v29_v48 = vld [vmem:[%s873_s0 + $0x70] sm:$0xff] }
  0x2e   :  { %v101_v23 = vpack.c.bf16 %v81_v16, %v79_v15  ;;  %v96_v26 = vpack.c.bf16 %v70_v18, %v68_v17  ;;  %v46_v33 = vld [vmem:[%s873_s0 + $0xf8] sm:$0xff]  ;;  %v69_v35 = vmul.f32 %v741_v46, %v25_v25  ;;  %v83_v36 = vmul.f32 %v741_v46, %v39_v28  ;;  %v43_v49 = vld [vmem:[%s873_s0 + $0xe0] sm:$0xff] }
  0x2f   :  { %322 = vmatpush1.bf16.msra.mxu0 %v562_v38  ;;  %519 = vmatpush1.bf16.msra.mxu1 %v562_v38  ;;  %v104_v27 = vpack.c.bf16 %v86_v20, %v84_v19  ;;  %v85_v37 = vmul.f32 %v741_v46, %v41_v29  ;;  %v72_v38 = vmul.f32 %v685_v22, %v28_v30 }
  0x30   :  { %323 = vmatprep.subr.bf16.mxu0 %v563_v39  ;;  %504 = vmatprep.subr.bf16.mxu1 %v563_v39  ;;  %v74_v39 = vmul.f32 %v685_v22, %v30_v31  ;;  %v95_v42 = vpack.c.bf16 %v69_v35, %v67_v34  ;;  %v73_v51 = vmul.f32 %v741_v46, %v29_v48 }
  0x31   :  { %v87_v52 = vmul.f32 %v741_v46, %v43_v49 }
  0x33   :  { %324 = vmatpush1.bf16.msra.mxu0 %v565_v40  ;;  %520 = vmatpush1.bf16.msra.mxu1 %v565_v40  ;;  %v88_v40 = vmul.f32 %v685_v22, %v44_v32 }
  0x34   :  { %325 = vmatprep.subr.bf16.mxu0 %v566_v41  ;;  %505 = vmatprep.subr.bf16.mxu1 %v566_v41  ;;  %v90_v41 = vmul.f32 %v685_v22, %v46_v33  ;;  %v45_v22 = vld [vmem:[%s873_s0 + $0xf0] sm:$0xff] }
  0x35   :  { %v89_v53 = vmul.f32 %v741_v46, %v45_v22 }
  0x37   :  { %326 = vmatpush1.bf16.msra.mxu0 %v568_v43  ;;  %521 = vmatpush1.bf16.msra.mxu1 %v568_v43  ;;  %v103_v43 = vpack.c.bf16 %v85_v37, %v83_v36  ;;  %v105_v55 = vpack.c.bf16 %v89_v53, %v87_v52 }
  0x38   :  { %327 = vmatprep.subr.bf16.mxu0 %v569_v44  ;;  %506 = vmatprep.subr.bf16.mxu1 %v569_v44  ;;  %v27_v44 = vld [vmem:[%s873_s0 + $0x60] sm:$0xff]  ;;  %s599_s0 = smov [#allocation2]  }
  0x39   :  { %v71_v50 = vmul.f32 %v741_v46, %v27_v44  ;;  %s449_s28 = sshll.u32 %s599_s0, 4  ;;  %s450_s28 = int_to_ptr.vmem [resolvable:$true] %s449_s28 }
  0x3a   :  { %s575_s29 = scalar_lea.vmem %s450_s28, 4096  ;;  %p580_p1 = scmp.lt.s32.totalorder %s450_s28, %s450_s28 }
  0x3b   :  { %328 = vmatpush1.bf16.msra.mxu0 %v571_v45  ;;  %522 = vmatpush1.bf16.msra.mxu1 %v571_v45  ;;  %v98_v45 = vpack.c.bf16 %v74_v39, %v72_v38  ;;  %v97_v54 = vpack.c.bf16 %v73_v51, %v71_v50  ;;  %p576_p0 = scmp.ne.s32.totalorder %s450_s28, %s575_s29  ;;  %p581_p2 = scmp.lt.s32.totalorder %s575_s29, %s575_s29 }
  0x3c   :  { %329 = vmatprep.subr.bf16.mxu0 %v572_v47  ;;  %507 = vmatprep.subr.bf16.mxu1 %v572_v47  ;;  %v106_v47 = vpack.c.bf16 %v90_v41, %v88_v40 }
  0x3d   :  { %p582_p3 = por %p581_p2, %p580_p1 }
  0x3f   :  { %330 = vmatpush1.bf16.msra.mxu0 %v574_v61  ;;  %523 = vmatpush1.bf16.msra.mxu1 %v574_v61  ;;  %p583_p4 = pnand %p582_p3, %p576_p0 }
  0x42   :  { %332 = vmatmul.mubr.bf16.vlgmr.msra.gmra.mrb[0].mxu0 %v91_v1  ;;  %372 = vmatmul.mubr.bf16.vlgmr.msra.gmra.mrb[0].mxu1 %v99_v2 }
  0x43   :  { %341 = vmatprep.mubr.bf16.mxu0 %v94_v5  ;;  %381 = vmatprep.mubr.bf16.mxu1 %v102_v6 }
  0x4a   :  { %342 = vmatmul.mubr.bf16.gmra.mrb[4].mxu0 %v93_v21  ;;  %382 = vmatmul.mubr.bf16.gmra.mrb[4].mxu1 %v101_v23 }
  0x4b   :  { %351 = vmatprep.mubr.bf16.mxu0 %v96_v26  ;;  %391 = vmatprep.mubr.bf16.mxu1 %v104_v27 }
  0x52   :  { %352 = vmatmul.mubr.bf16.gmra.mrb[8].mxu0 %v95_v42  ;;  %392 = vmatmul.mubr.bf16.gmra.mrb[8].mxu1 %v103_v43 }
  0x53   :  { %361 = vmatprep.mubr.bf16.mxu0 %v98_v45  ;;  %401 = vmatprep.mubr.bf16.mxu1 %v106_v47 }
  0x5a   :  { %362 = vmatmul.mubr.bf16.gmra.mrb[12].mxu0 %v97_v54  ;;  %402 = vmatmul.mubr.bf16.gmra.mrb[12].mxu1 %v105_v55 }
 0x115   :  { %v333_v56 = vpop.f32.mrb[0].mxu0  ;;  %v373_v57 = vpop.f32.mrb[0].mxu1 }
 0x116   :  { %412 = vst [vmem:[#allocation2] sm:$0xff] %v333_v56  ;;  %428 = vst [vmem:[#allocation2 + $0x80] sm:$0xff] %v373_v57  ;;  %v335_v58 = vpop.f32.mrb[1].mxu0  ;;  %v375_v59 = vpop.f32.mrb[1].mxu1 }
 0x117   :  { %413 = vst [vmem:[#allocation2 + $0x8] sm:$0xff] %v335_v58  ;;  %429 = vst [vmem:[#allocation2 + $0x88] sm:$0xff] %v375_v59  ;;  %v337_v60 = vpop.f32.mrb[2].mxu0  ;;  %v377_v61 = vpop.f32.mrb[2].mxu1 }
 0x118   :  { %414 = vst [vmem:[#allocation2 + $0x10] sm:$0xff] %v337_v60  ;;  %430 = vst [vmem:[#allocation2 + $0x90] sm:$0xff] %v377_v61  ;;  %v339_v62 = vpop.f32.mrb[3].mxu0  ;;  %v379_v46 = vpop.f32.mrb[3].mxu1 }
 0x119   :  { %415 = vst [vmem:[#allocation2 + $0x18] sm:$0xff] %v339_v62  ;;  %431 = vst [vmem:[#allocation2 + $0x98] sm:$0xff] %v379_v46 }
 0x11d   :  { %v343_v63 = vpop.f32.mrb[4].mxu0  ;;  %v383_v0 = vpop.f32.mrb[4].mxu1 }
 0x11e   :  { %416 = vst [vmem:[#allocation2 + $0x20] sm:$0xff] %v343_v63  ;;  %432 = vst [vmem:[#allocation2 + $0xa0] sm:$0xff] %v383_v0  ;;  %v345_v1 = vpop.f32.mrb[5].mxu0  ;;  %v385_v2 = vpop.f32.mrb[5].mxu1 }
 0x11f   :  { %417 = vst [vmem:[#allocation2 + $0x28] sm:$0xff] %v345_v1  ;;  %433 = vst [vmem:[#allocation2 + $0xa8] sm:$0xff] %v385_v2  ;;  %v347_v3 = vpop.f32.mrb[6].mxu0  ;;  %v387_v4 = vpop.f32.mrb[6].mxu1 }
 0x120   :  { %418 = vst [vmem:[#allocation2 + $0x30] sm:$0xff] %v347_v3  ;;  %434 = vst [vmem:[#allocation2 + $0xb0] sm:$0xff] %v387_v4  ;;  %v349_v5 = vpop.f32.mrb[7].mxu0  ;;  %v389_v6 = vpop.f32.mrb[7].mxu1 }
 0x121   :  { %419 = vst [vmem:[#allocation2 + $0x38] sm:$0xff] %v349_v5  ;;  %435 = vst [vmem:[#allocation2 + $0xb8] sm:$0xff] %v389_v6 }
 0x125   :  { %v353_v7 = vpop.f32.mrb[8].mxu0  ;;  %v393_v8 = vpop.f32.mrb[8].mxu1 }
 0x126   :  { %420 = vst [vmem:[#allocation2 + $0x40] sm:$0xff] %v353_v7  ;;  %436 = vst [vmem:[#allocation2 + $0xc0] sm:$0xff] %v393_v8  ;;  %v355_v9 = vpop.f32.mrb[9].mxu0  ;;  %v395_v10 = vpop.f32.mrb[9].mxu1 }
 0x127   :  { %421 = vst [vmem:[#allocation2 + $0x48] sm:$0xff] %v355_v9  ;;  %437 = vst [vmem:[#allocation2 + $0xc8] sm:$0xff] %v395_v10  ;;  %v357_v11 = vpop.f32.mrb[10].mxu0  ;;  %v397_v12 = vpop.f32.mrb[10].mxu1 }
 0x128   :  { %422 = vst [vmem:[#allocation2 + $0x50] sm:$0xff] %v357_v11  ;;  %438 = vst [vmem:[#allocation2 + $0xd0] sm:$0xff] %v397_v12  ;;  %v359_v13 = vpop.f32.mrb[11].mxu0  ;;  %v399_v14 = vpop.f32.mrb[11].mxu1 }
 0x129   :  { %423 = vst [vmem:[#allocation2 + $0x58] sm:$0xff] %v359_v13  ;;  %439 = vst [vmem:[#allocation2 + $0xd8] sm:$0xff] %v399_v14 }
 0x12d   :  { %v363_v15 = vpop.f32.mrb[12].mxu0  ;;  %v403_v16 = vpop.f32.mrb[12].mxu1 }
 0x12e   :  { %424 = vst [vmem:[#allocation2 + $0x60] sm:$0xff] %v363_v15  ;;  %440 = vst [vmem:[#allocation2 + $0xe0] sm:$0xff] %v403_v16  ;;  %v365_v17 = vpop.f32.mrb[13].mxu0  ;;  %v405_v18 = vpop.f32.mrb[13].mxu1 }
 0x12f   :  { %425 = vst [vmem:[#allocation2 + $0x68] sm:$0xff] %v365_v17  ;;  %441 = vst [vmem:[#allocation2 + $0xe8] sm:$0xff] %v405_v18  ;;  %v367_v19 = vpop.f32.mrb[14].mxu0  ;;  %v407_v20 = vpop.f32.mrb[14].mxu1 }
 0x130   :  { %426 = vst [vmem:[#allocation2 + $0x70] sm:$0xff] %v367_v19  ;;  %442 = vst [vmem:[#allocation2 + $0xf0] sm:$0xff] %v407_v20  ;;  %v369_v21 = vpop.f32.mrb[15].mxu0  ;;  %v409_v23 = vpop.f32.mrb[15].mxu1 }
 0x131   :  { %427 = vst [vmem:[#allocation2 + $0x78] sm:$0xff] %v369_v21  ;;  %443 = vst [vmem:[#allocation2 + $0xf8] sm:$0xff] %v409_v23 }
 0x132   :  { %586 = shalt.err (!%p583_p4)
}
 0x133   :  { %s587_s5 = scalar_lea.hbm %s876_s3, 4096 }
 0x134   :  { %p588_p5 = scmp.ne.s32.totalorder %s876_s3, %s587_s5  ;;  %p591_p6 = scmp.lt.u32.totalorder %s587_s5, %s876_s3 }
 0x136   :  { %p593_p7 = pnand %p591_p6, %p588_p5 }
 0x138   :  { %596 = shalt.err (!%p593_p7)
}
 0x139   :  { %s600_s10 = smov 256   ;;  %s601_s11 = smov 16  }
 0x13a   :  { %455 = dma.vmem_to_hbm [thread:$0]  %s450_s28, 4096, %s876_s3, [#allocation3], %s600_s10, %s600_s10, %s601_s11  }
 0x13b   :  { %597 = dma.done.wait [#allocation3], 4096  }
 0x13c   :  { %598 = vsyncadd [#allocation3], 4294963200 }
 0x13d   :  { %459 = vsyncpa [#allocation3], 1 }

</bundles_post_ra>
